<compile_context>
chip_gen: v7x
topology: tpu7x:2x2x1
jax: 0.10.0
libtpu: 0.0.40
codegen_flags: <defaults>
</compile_context>

<pallas_src>
import functools

import jax
import jax.numpy as jnp
import numpy as np
from jax.experimental import pallas as pl
from jax.experimental.pallas import tpu as pltpu

# ----------------------- model hyper-parameters (scaled-down) -----------------------
PATCH = 16          # backbone stride (matches spatial_scale = 1/16)
C_BODY4 = 64        # stands for 1024-ch body4 features
C_MID = 32          # bottleneck mid channels (stands for 512)
C_HEAD = 128        # ROI-head output channels (stands for 2048)
ROI_SIZE = 14       # ROIAlign output_size = (14, 14)
HEAD_SIZE = 7       # after stride-2 head; AvgPool2d(7)
COORD_DIM = 16      # sin/cos dim (stands for 256); 4*2*16 == C_HEAD, like 4*2*256 == 2048
FINAL_DIM = 96      # stands for final_dim=768
SPATIAL_SCALE = 1.0 / 16.0

NB = 8                                   # boxes per ROI-head grid step (multiple of 8 so TM % 8 == 0)
TM = NB * HEAD_SIZE * HEAD_SIZE          # 392 rows per block (box-major, 7x7 row-major within a box)


def _round_up(a, b):
    return (a + b - 1) // b * b


# ---------------- host-side constant tables for the fused kernels ----------------
def _tap_mask():
    """[9, TM, 1]: 1 where a 3x3/stride-2 tap reads a real pixel, 0 where it reads conv zero-padding."""
    m = np.zeros((9, HEAD_SIZE, HEAD_SIZE), np.float32)
    for ky in range(3):
        for kx in range(3):
            yy = 2 * np.arange(HEAD_SIZE) + ky        # index into the zero-padded 16x16 plane
            xx = 2 * np.arange(HEAD_SIZE) + kx
            vy = ((yy >= 1) & (yy <= ROI_SIZE)).astype(np.float32)
            vx = ((xx >= 1) & (xx <= ROI_SIZE)).astype(np.float32)
            m[ky * 3 + kx] = vy[:, None] * vx[None, :]
    m = m.reshape(9, 1, HEAD_SIZE * HEAD_SIZE)
    return np.tile(m, (1, NB, 1)).reshape(9, TM, 1)


def _pool_matrix():
    """[NB, TM] block-diagonal 7x7 average-pooling matrix (one row per box in the block)."""
    return np.kron(np.eye(NB, dtype=np.float32),
                   np.full((1, HEAD_SIZE * HEAD_SIZE), 1.0 / (HEAD_SIZE * HEAD_SIZE), np.float32))


def _coord_tables(dim):
    """sel [4, 8*dim]: per-position sin/cos frequencies; phase [1, 8*dim]: 0 (sin) or pi/2 (cos)."""
    scale = (100.0 / (1000.0 ** (np.arange(dim, dtype=np.float64) / dim))).astype(np.float32)
    sel = np.zeros((4, 8 * dim), np.float32)
    phase = np.zeros((1, 8 * dim), np.float32)
    for p in range(4):
        base = p * 2 * dim
        sel[p, base:base + dim] = scale
        sel[p, base + dim:base + 2 * dim] = scale
        phase[0, base + dim:base + 2 * dim] = np.pi / 2.0       # cos(x) == sin(x + pi/2)
    return sel, phase


_TAP_MASK = _tap_mask()
_POOL_MAT = _pool_matrix()
_COORD_SEL, _COORD_PHASE = _coord_tables(COORD_DIM)


# ----------------------------- Pallas kernels -----------------------------
def matmul_bias_kernel(a_ref, b_ref, bias_ref, o_ref, *, relu):
    """Single-shot matmul (K/N whole in VMEM) with fused bias + optional ReLU epilogue."""
    r = jnp.dot(a_ref[...], b_ref[...], preferred_element_type=jnp.float32) + bias_ref[...]
    if relu:
        r = jnp.maximum(r, 0.0)
    o_ref[...] = r.astype(o_ref.dtype)


def roi_head_kernel(xg_ref, mask_ref, w1_ref, b1_ref, w2_ref, b2_ref,
                    w3_ref, b3_ref, wd_ref, bd_ref, pool_ref,
                    raw_ref, pooled_ref, acc2_ref, ds_ref):
    """Fused Bottleneck-style ROI head.

    Grid = (box_block, tap) with tap in 0..8 being the 3x3/stride-2 conv taps ("arbitrary"
    reduction axis).  Because the leading 1x1 conv is pointwise, each tap's h1 can be
    recomputed from the pre-gathered input tap; the mask re-zeroes positions that read the
    conv's zero-padding.  Epilogue (last tap): bias+ReLU, 1x1 conv to C_HEAD, downsample
    residual (saved at the center tap), add+ReLU, raw store, and avg-pool as a matmul.
    """
    k = pl.program_id(1)

    @pl.when(k == 0)
    def _():
        acc2_ref[...] = jnp.zeros_like(acc2_ref)

    x_k = xg_ref[...]                                            # [TM, C_BODY4] bf16 (tap k)
    h1 = jnp.maximum(
        jnp.dot(x_k, w1_ref[...], preferred_element_type=jnp.float32) + b1_ref[...], 0.0)
    h1 = h1 * mask_ref[...]                                      # zero the conv-padding taps
    acc2_ref[...] += jnp.dot(h1.astype(jnp.bfloat16), w2_ref[...],
                             preferred_element_type=jnp.float32)

    @pl.when(k == 4)                                             # center tap == x[:, ::2, ::2, :]
    def _():
        ds_ref[...] = jnp.dot(x_k, wd_ref[...],
                              preferred_element_type=jnp.float32) + bd_ref[...]

    @pl.when(k == pl.num_programs(1) - 1)
    def _():
        h2 = jnp.maximum(acc2_ref[...] + b2_ref[...], 0.0)
        h3 = jnp.dot(h2.astype(jnp.bfloat16), w3_ref[...],
                     preferred_element_type=jnp.float32) + b3_ref[...]
        out = jnp.maximum(h3 + ds_ref[...], 0.0)                 # residual add + ReLU, [TM, C_HEAD]
        raw_ref[...] = out.astype(raw_ref.dtype)
        pooled_ref[...] = jnp.dot(pool_ref[...], out,            # fused AvgPool2d(7) as a matmul
                                  preferred_element_type=jnp.float32).astype(pooled_ref.dtype)


def obj_downsample_kernel(box_ref, sel_ref, phase_ref, pooled_ref,
                          wc_ref, wp_ref, b_ref, o_ref):
    """Fused coordinate_embeddings (lane-dense 128-wide sin/cos) + Linear + ReLU."""
    b = box_ref[...]                                   # [NB, 6] = (x1, y1, x2, y2, w_img, h_img)
    x1, y1, x2, y2 = b[:, 0:1], b[:, 1:2], b[:, 2:3], b[:, 3:4]
    w, h = b[:, 4:5], b[:, 5:6]
    cx = (x1 + x2) * 0.5 / w
    cy = (y1 + y2) * 0.5 / h
    rw = (x2 - x1) / w
    rh = (y2 - y1) / h
    sel = sel_ref[...]                                 # [4, 8*COORD_DIM]
    arg = cx * sel[0:1, :] + cy * sel[1:2, :] + rw * sel[2:3, :] + rh * sel[3:4, :]
    coord = jnp.sin(arg + phase_ref[...])              # [NB, 8*COORD_DIM] sin/cos embedding
    r = (jnp.dot(coord.astype(jnp.bfloat16), wc_ref[...], preferred_element_type=jnp.float32)
         + jnp.dot(pooled_ref[...].astype(jnp.bfloat16), wp_ref[...],
                   preferred_element_type=jnp.float32)
         + b_ref[...])
    o_ref[...] = jnp.maximum(r, 0.0)                   # ReLU (Dropout p=0.1 is a no-op in eval)


# ----------------------------- Pallas wrappers -----------------------------
def matmul_bias(x, w, b, relu=False, tm_cap=256):
    """y = relu?(x @ w + b); bf16 operands / f32 accumulate; K and N stay whole (no K grid,
    no 128-padding of tiny M/K/N); M padded only to the 16-row packing multiple."""
    M, K = x.shape
    N = w.shape[1]
    tm = min(_round_up(M, 16), tm_cap)
    Mp = _round_up(M, tm)
    xp = jnp.pad(x, ((0, Mp - M), (0, 0))).astype(jnp.bfloat16)
    wb = w.astype(jnp.bfloat16)
    bb = b.reshape(1, N).astype(jnp.float32)

    out = pl.pallas_call(
        functools.partial(matmul_bias_kernel, relu=relu),
        out_shape=jax.ShapeDtypeStruct((Mp, N), jnp.float32),
        grid_spec=pltpu.PrefetchScalarGridSpec(
            num_scalar_prefetch=0,
            grid=(Mp // tm,),
            in_specs=[
                pl.BlockSpec((tm, K), lambda i: (i, 0)),
                pl.BlockSpec((K, N), lambda i: (0, 0)),
                pl.BlockSpec((1, N), lambda i: (0, 0)),
            ],
            out_specs=pl.BlockSpec((tm, N), lambda i: (i, 0)),
        ),
        compiler_params=pltpu.CompilerParams(dimension_semantics=("parallel",)),
    )(xp, wb, bb)
    return out[:M]


def roi_head(roi_p, params):
    """Fused ROI head + AvgPool2d(7).  roi_p: [Npad, 14, 14, C_BODY4], Npad a multiple of NB.
    Returns raw [Npad*49, C_HEAD] (7x7 features, box-major) and pooled [Npad, C_HEAD]."""
    Npad = roi_p.shape[0]
    n_blk = Npad // NB

    # Tap gather of the *input* (XLA glue): the 1x1 conv is pointwise, so gathering before
    # it is equivalent; the in-kernel mask re-zeroes the conv-padding positions.
    xp = jnp.pad(roi_p, ((0, 0), (1, 1), (1, 1), (0, 0)))
    taps = jnp.stack([xp[:, ky:ky + ROI_SIZE:2, kx:kx + ROI_SIZE:2, :]
                      for ky in range(3) for kx in range(3)], axis=0)      # [9, Npad, 7, 7, C]
    xg = taps.reshape(9, Npad * HEAD_SIZE * HEAD_SIZE, C_BODY4).astype(jnp.bfloat16)

    mask = jnp.asarray(_TAP_MASK)                   # [9, TM, 1] f32
    pool = jnp.asarray(_POOL_MAT)                   # [NB, TM]   f32

    raw, pooled = pl.pallas_call(
        roi_head_kernel,
        out_shape=(jax.ShapeDtypeStruct((Npad * HEAD_SIZE * HEAD_SIZE, C_HEAD), jnp.float32),
                   jax.ShapeDtypeStruct((Npad, C_HEAD), jnp.float32)),
        grid_spec=pltpu.PrefetchScalarGridSpec(
            num_scalar_prefetch=0,
            grid=(n_blk, 9),
            in_specs=[
                pl.BlockSpec((None, TM, C_BODY4), lambda i, k: (k, i, 0)),    # gathered taps
                pl.BlockSpec((None, TM, 1), lambda i, k: (k, 0, 0)),          # tap validity mask
                pl.BlockSpec((C_BODY4, C_MID), lambda i, k: (0, 0)),          # w1
                pl.BlockSpec((1, C_MID), lambda i, k: (0, 0)),                # b1
                pl.BlockSpec((None, C_MID, C_MID), lambda i, k: (k, 0, 0)),   # w2[tap]
                pl.BlockSpec((1, C_MID), lambda i, k: (0, 0)),                # b2
                pl.BlockSpec((C_MID, C_HEAD), lambda i, k: (0, 0)),           # w3
                pl.BlockSpec((1, C_HEAD), lambda i, k: (0, 0)),               # b3
                pl.BlockSpec((C_BODY4, C_HEAD), lambda i, k: (0, 0)),         # wd (downsample)
                pl.BlockSpec((1, C_HEAD), lambda i, k: (0, 0)),               # bd
                pl.BlockSpec((NB, TM), lambda i, k: (0, 0)),                  # pooling matrix
            ],
            out_specs=[
                pl.BlockSpec((TM, C_HEAD), lambda i, k: (i, 0)),              # raw 7x7 features
                pl.BlockSpec((NB, C_HEAD), lambda i, k: (i, 0)),              # avg-pooled features
            ],
            scratch_shapes=[pltpu.VMEM((TM, C_MID), jnp.float32),             # h2 pre-act accumulator
                            pltpu.VMEM((TM, C_HEAD), jnp.float32)],           # downsample residual
        ),
        compiler_params=pltpu.CompilerParams(
            dimension_semantics=("parallel", "arbitrary")),
    )(xg, mask,
      params['w1'].astype(jnp.bfloat16), params['b1'].reshape(1, C_MID).astype(jnp.float32),
      params['w2'].astype(jnp.bfloat16), params['b2'].reshape(1, C_MID).astype(jnp.float32),
      params['w3'].astype(jnp.bfloat16), params['b3'].reshape(1, C_HEAD).astype(jnp.float32),
      params['wd'].astype(jnp.bfloat16), params['bd'].reshape(1, C_HEAD).astype(jnp.float32),
      pool)
    return raw, pooled


def obj_downsample(boxes6_p, pooled_p, params):
    """Fused coordinate embedding + Linear + ReLU.  boxes6_p/pooled_p padded to a multiple of NB."""
    Npad = boxes6_p.shape[0]
    CD = 4 * 2 * COORD_DIM
    wc = params['w_fc'][:CD].astype(jnp.bfloat16)       # rows matching the coord-embed half
    wp = params['w_fc'][CD:].astype(jnp.bfloat16)       # rows matching the pooled-feature half
    bfc = params['b_fc'].reshape(1, FINAL_DIM).astype(jnp.float32)
    sel = jnp.asarray(_COORD_SEL)
    phase = jnp.asarray(_COORD_PHASE)

    return pl.pallas_call(
        obj_downsample_kernel,
        out_shape=jax.ShapeDtypeStruct((Npad, FINAL_DIM), jnp.float32),
        grid_spec=pltpu.PrefetchScalarGridSpec(
            num_scalar_prefetch=0,
            grid=(Npad // NB,),
            in_specs=[
                pl.BlockSpec((NB, 6), lambda i: (i, 0)),
                pl.BlockSpec((4, CD), lambda i: (0, 0)),
                pl.BlockSpec((1, CD), lambda i: (0, 0)),
                pl.BlockSpec((NB, C_HEAD), lambda i: (i, 0)),
                pl.BlockSpec((CD, FINAL_DIM), lambda i: (0, 0)),
                pl.BlockSpec((C_HEAD, FINAL_DIM), lambda i: (0, 0)),
                pl.BlockSpec((1, FINAL_DIM), lambda i: (0, 0)),
            ],
            out_specs=pl.BlockSpec((NB, FINAL_DIM), lambda i: (i, 0)),
        ),
        compiler_params=pltpu.CompilerParams(dimension_semantics=("parallel",)),
    )(boxes6_p, sel, phase, pooled_p, wc, wp, bfc)


# ----------------------------- plain-JAX glue -----------------------------
def roi_align(fm, batch_idx, boxes, scale, out_size):
    """Simplified ROIAlign (one bilinear sample per bin). fm: [B, Hf, Wf, C] NHWC."""
    Hf, Wf = fm.shape[1], fm.shape[2]

    def one(bi, box):
        img = fm[bi]
        x1, y1, x2, y2 = box[0] * scale, box[1] * scale, box[2] * scale, box[3] * scale
        rw = jnp.maximum(x2 - x1, 1.0)
        rh = jnp.maximum(y2 - y1, 1.0)
        ys = y1 + (jnp.arange(out_size, dtype=jnp.float32) + 0.5) * (rh / out_size)
        xs = x1 + (jnp.arange(out_size, dtype=jnp.float32) + 0.5) * (rw / out_size)
        y = jnp.clip(ys, 0.0, Hf - 1.0)
        x = jnp.clip(xs, 0.0, Wf - 1.0)
        y0 = jnp.floor(y).astype(jnp.int32)
        x0 = jnp.floor(x).astype(jnp.int32)
        y1i = jnp.minimum(y0 + 1, Hf - 1)
        x1i = jnp.minimum(x0 + 1, Wf - 1)
        ly = (y - y0.astype(jnp.float32))[:, None, None]
        lx = (x - x0.astype(jnp.float32))[None, :, None]
        v00 = img[y0][:, x0]
        v01 = img[y0][:, x1i]
        v10 = img[y1i][:, x0]
        v11 = img[y1i][:, x1i]
        top = v00 * (1.0 - lx) + v01 * lx
        bot = v10 * (1.0 - lx) + v11 * lx
        return top * (1.0 - ly) + bot * ly

    return jax.vmap(one)(batch_idx, boxes)


def fast_rcnn_forward(params, images, boxes, box_mask, im_info):
    """images: [B,3,H,W] NCHW; boxes: [B,max_boxes,4]; box_mask: [B,max_boxes]; im_info: [B,3]."""
    B = images.shape[0]
    max_boxes = boxes.shape[1]

    # box_inds = box_mask.nonzero()  (host-side; dynamic shape)
    mask_np = np.asarray(box_mask)
    bi, ji = np.nonzero(mask_np)
    assert bi.shape[0] > 0
    n_valid = int(bi.shape[0])
    pos_in_batch = np.concatenate(
        [np.arange(int(mask_np[b].sum())) for b in range(B)]).astype(np.int32)

    # ---- backbone stand-in: stride-16 patch-embedding conv (Pallas matmul) ----
    x = jnp.transpose(images, (0, 2, 3, 1))                        # NHWC
    Hp, Wp = x.shape[1] // PATCH, x.shape[2] // PATCH
    patches = (x.reshape(B, Hp, PATCH, Wp, PATCH, 3)
                 .transpose(0, 1, 3, 2, 4, 5)
                 .reshape(B * Hp * Wp, PATCH * PATCH * 3))
    body4 = matmul_bias(patches, params['w_bb'], params['b_bb'], relu=True)
    body4 = body4.reshape(B, Hp, Wp, C_BODY4)                      # img_feats['body4'] (NHWC)

    # ---- rois = (batch_idx, box); ROIAlign (plain-JAX bilinear gather glue) ----
    boxes_valid = boxes[bi, ji]                                    # [N, 4]
    roi_feats = roi_align(body4, jnp.asarray(bi, jnp.int32), boxes_valid,
                          SPATIAL_SCALE, ROI_SIZE)                 # [N, 14, 14, C_BODY4]
    N = n_valid
    Npad = _round_up(N, NB)
    roi_p = jnp.pad(roi_feats, ((0, Npad - N), (0, 0), (0, 0), (0, 0)))

    # ---- fused ROI head + AvgPool2d(7) (ONE Pallas kernel) ----
    raw_flat, pooled = roi_head(roi_p, params)                     # [Npad*49, C_HEAD], [Npad, C_HEAD]
    head_nhwc = raw_flat.reshape(Npad, HEAD_SIZE, HEAD_SIZE, C_HEAD)[:N]
    post_roialign_raw = jnp.transpose(head_nhwc, (0, 3, 1, 2))     # [N, C_HEAD, 7, 7] (NCHW)
    post_roialign = pooled[:N]                                     # [N, C_HEAD]

    # ---- fused coordinate_embeddings + obj_downsample Linear+ReLU (ONE Pallas kernel) ----
    boxes6 = jnp.concatenate([boxes_valid, im_info[bi, :2]], axis=1)          # [N, 6]
    boxes6_p = jnp.concatenate(
        [boxes6, jnp.ones((Npad - N, 6), jnp.float32)], axis=0)   # pad with ones (avoid div-by-0)
    final_feats = obj_downsample(boxes6_p, pooled, params)[:N]     # [N, FINAL_DIM]

    # ---- pad_sequence + pad to boxes.shape[1] ----
    def scatter_pad(vals):
        out = jnp.zeros((B, max_boxes) + vals.shape[1:], vals.dtype)
        return out.at[bi, pos_in_batch].set(vals)

    return {
        'obj_reps_raw': scatter_pad(post_roialign),        # [B, max_boxes, C_HEAD]
        'obj_reps': scatter_pad(final_feats),              # [B, max_boxes, FINAL_DIM]
        'obj_reps_rawraw': scatter_pad(post_roialign_raw)  # [B, max_boxes, C_HEAD, 7, 7]
    }


# ----------------------------- main -----------------------------
if __name__ == "__main__":
    key = jax.random.PRNGKey(0)
    ks = jax.random.split(key, 12)

    params = {
        'w_bb': jax.random.normal(ks[0], (PATCH * PATCH * 3, C_BODY4), jnp.float32) * 0.02,
        'b_bb': jnp.zeros((C_BODY4,), jnp.float32),
        'w1':   jax.random.normal(ks[1], (C_BODY4, C_MID), jnp.float32) * 0.05,
        'b1':   jnp.zeros((C_MID,), jnp.float32),
        'w2':   jax.random.normal(ks[2], (9, C_MID, C_MID), jnp.float32) * 0.05,   # 3x3 conv taps
        'b2':   jnp.zeros((C_MID,), jnp.float32),
        'w3':   jax.random.normal(ks[3], (C_MID, C_HEAD), jnp.float32) * 0.05,
        'b3':   jnp.zeros((C_HEAD,), jnp.float32),
        'wd':   jax.random.normal(ks[4], (C_BODY4, C_HEAD), jnp.float32) * 0.05,
        'bd':   jnp.zeros((C_HEAD,), jnp.float32),
        'w_fc': jax.random.normal(ks[5], (4 * 2 * COORD_DIM + C_HEAD, FINAL_DIM), jnp.float32) * 0.05,
        'b_fc': jnp.zeros((FINAL_DIM,), jnp.float32),
    }

    images = jax.random.normal(ks[6], (2, 3, 64, 64), jnp.float32)   # NCHW like PyTorch
    boxes = jnp.array(
        [[[4.0, 4.0, 40.0, 40.0], [10.0, 8.0, 60.0, 56.0], [0.0, 0.0, 63.0, 63.0], [0.0, 0.0, 0.0, 0.0]],
         [[2.0, 2.0, 30.0, 30.0], [16.0, 16.0, 48.0, 48.0], [0.0, 0.0, 0.0, 0.0], [0.0, 0.0, 0.0, 0.0]]],
        jnp.float32)                                                  # [2, 4, 4]
    box_mask = np.array([[1, 1, 1, 0], [1, 1, 0, 0]], np.int32)       # [2, 4]
    im_info = jnp.array([[64.0, 64.0, 1.0], [64.0, 64.0, 1.0]], jnp.float32)

    out = fast_rcnn_forward(params, images, boxes, box_mask, im_info)
    out = jax.tree_util.tree_map(jax.block_until_ready, out)

    assert out['obj_reps'].shape == (2, 4, FINAL_DIM)
    assert out['obj_reps_raw'].shape == (2, 4, C_HEAD)
    assert out['obj_reps_rawraw'].shape == (2, 4, C_HEAD, HEAD_SIZE, HEAD_SIZE)
    assert all(bool(jnp.all(jnp.isfinite(v))) for v in out.values())
    print("KERNEL_OK")
</pallas_src>

<mosaic_0001>
module attributes {stable_mosaic.version = 11 : i64} {
  func.func @matmul_bias_kernel(%arg0: i32, %arg1: memref<32x768xbf16, #tpu.memory_space<vmem>>, %arg2: memref<768x64xbf16, #tpu.memory_space<vmem>>, %arg3: memref<1x64xf32, #tpu.memory_space<vmem>>, %arg4: memref<32x64xf32, #tpu.memory_space<vmem>>) attributes {dimension_semantics = [#tpu.dimension_semantics<parallel>], iteration_bounds = array<i64: 1>, scalar_prefetch = 0 : i64, scratch_operands = 0 : i64, tpu.core_type = #tpu.core_type<tc>, window_params = [{transform_indices = @transform_0, window_bounds = array<i64: 32, 768>}, {pipeline_mode = #tpu.pipeline_mode<synchronous>, transform_indices = @transform_1, window_bounds = array<i64: 768, 64>}, {pipeline_mode = #tpu.pipeline_mode<synchronous>, transform_indices = @transform_2, window_bounds = array<i64: 1, 64>}, {transform_indices = @transform_3, window_bounds = array<i64: 32, 64>}]} {
    %c0 = arith.constant 0 : index
    %c0_0 = arith.constant 0 : index
    %0 = vector.load %arg1[%c0, %c0_0] : memref<32x768xbf16, #tpu.memory_space<vmem>>, vector<32x768xbf16>
    %c0_1 = arith.constant 0 : index
    %c0_2 = arith.constant 0 : index
    %1 = vector.load %arg2[%c0_1, %c0_2] : memref<768x64xbf16, #tpu.memory_space<vmem>>, vector<768x64xbf16>
    %cst = arith.constant dense<0.000000e+00> : vector<32x64xf32>
    %2 = tpu.matmul %0, %1, %cst {dimension_numbers = #tpu.dot_dimension_numbers<[1], [0], [0], [1], [0, 0, 1, 1], [], []>} : vector<32x768xbf16>, vector<768x64xbf16>, vector<32x64xf32> -> vector<32x64xf32>
    %c0_3 = arith.constant 0 : index
    %c0_4 = arith.constant 0 : index
    %3 = vector.load %arg3[%c0_3, %c0_4] : memref<1x64xf32, #tpu.memory_space<vmem>>, vector<1x64xf32>
    %4 = vector.broadcast %3 : vector<1x64xf32> to vector<32x64xf32>
    %5 = arith.addf %2, %4 : vector<32x64xf32>
    %cst_5 = arith.constant 0.000000e+00 : f32
    %6 = vector.broadcast %cst_5 : f32 to vector<32x64xf32>
    %7 = arith.maximumf %5, %6 : vector<32x64xf32>
    %c0_6 = arith.constant 0 : index
    %c0_7 = arith.constant 0 : index
    %8 = vector.load %arg4[%c0_6, %c0_7] : memref<32x64xf32, #tpu.memory_space<vmem>>, vector<32x64xf32>
    tpu.vector_store %arg4[%c0_6, %c0_7], %7 {strides = array<i32>} : memref<32x64xf32, #tpu.memory_space<vmem>>, vector<32x64xf32>,
    return
  }
  func.func @transform_0(%arg0: i32) -> (i32, i32) {
    %c0_i32 = arith.constant 0 : i32
    %c0_i32_0 = arith.constant 0 : i32
    return %arg0, %c0_i32 : i32, i32
  }
  func.func @transform_1(%arg0: i32) -> (i32, i32) {
    %c0_i32 = arith.constant 0 : i32
    %c0_i32_0 = arith.constant 0 : i32
    %c0_i32_1 = arith.constant 0 : i32
    return %c0_i32, %c0_i32_0 : i32, i32
  }
  func.func @transform_2(%arg0: i32) -> (i32, i32) {
    %c0_i32 = arith.constant 0 : i32
    %c0_i32_0 = arith.constant 0 : i32
    %c0_i32_1 = arith.constant 0 : i32
    return %c0_i32, %c0_i32_0 : i32, i32
  }
  func.func @transform_3(%arg0: i32) -> (i32, i32) {
    %c0_i32 = arith.constant 0 : i32
    %c0_i32_0 = arith.constant 0 : i32
    return %arg0, %c0_i32 : i32, i32
  }
}

</mosaic_0001>

<bundles_post_ra>
// kernel: tpu_custom_call.1
= control target key start
LH: loop header
LB: loop body
LE: loop exit
PB: predicated region body
PF: predicated region fallthrough
CT: control target
= control target key end

     0   :  { %s1123_s0 = inlined_call_operand.vmem [shape: bf16[32,768], index: 0, kind: input, shape index: {}]   ;;  %s1124_s1 = inlined_call_operand.vmem [shape: bf16[768,64], index: 1, kind: input, shape index: {}]   ;;  %s1125_s2 = inlined_call_operand.vmem [shape: f32[1,64], index: 2, kind: input, shape index: {}]   ;;  %s1126_s3 = inlined_call_operand.hbm [shape: f32[32,64], index: 3, kind: output, shape index: {}]  }
   0x1   :  { %v815_v0 = vld [vmem:[%s1124_s1 + $0x40] sm:$0xff]   ;;  %v819_v4 = vld [vmem:[%s1124_s1 + $0x48] sm:$0xff]   ;;  %v823_v8 = vld [vmem:[%s1124_s1 + $0x50] sm:$0xff]  }
   0x2   :  { %v816_v1 = vld [vmem:[%s1124_s1 + $0xc0] sm:$0xff]   ;;  %712 = vmatprep.subr.bf16.mxu0 %v815_v0  ;;  %v820_v5 = vld [vmem:[%s1124_s1 + $0xc8] sm:$0xff]   ;;  %v824_v9 = vld [vmem:[%s1124_s1 + $0xd0] sm:$0xff]  }
   0x3   :  { %v817_v2 = vld [vmem:[%s1124_s1] sm:$0xff]   ;;  %740 = vmatprep.subr.bf16.mxu1 %v816_v1  ;;  %v821_v6 = vld [vmem:[%s1124_s1 + $0x8] sm:$0xff]   ;;  %v825_v10 = vld [vmem:[%s1124_s1 + $0x10] sm:$0xff]  }
   0x4   :  { %v818_v3 = vld [vmem:[%s1124_s1 + $0x80] sm:$0xff]   ;;  %713 = vmatpush3.bf16.msra.mxu0 %v817_v2  ;;  %v822_v7 = vld [vmem:[%s1124_s1 + $0x88] sm:$0xff]   ;;  %v826_v11 = vld [vmem:[%s1124_s1 + $0x90] sm:$0xff]  }
   0x5   :  { %741 = vmatpush3.bf16.msra.mxu1 %v818_v3  ;;  %714 = vmatprep.subr.bf16.mxu0 %v819_v4  ;;  %v827_v12 = vld [vmem:[%s1124_s1 + $0x58] sm:$0xff]   ;;  %v831_v16 = vld [vmem:[%s1124_s1 + $0x60] sm:$0xff]   ;;  %v835_v20 = vld [vmem:[%s1124_s1 + $0x68] sm:$0xff]  }
   0x6   :  { %742 = vmatprep.subr.bf16.mxu1 %v820_v5  ;;  %v828_v13 = vld [vmem:[%s1124_s1 + $0xd8] sm:$0xff]   ;;  %v832_v17 = vld [vmem:[%s1124_s1 + $0xe0] sm:$0xff]   ;;  %v836_v21 = vld [vmem:[%s1124_s1 + $0xe8] sm:$0xff]  }
   0x7   :  { %v829_v14 = vld [vmem:[%s1124_s1 + $0x18] sm:$0xff]   ;;  %v833_v18 = vld [vmem:[%s1124_s1 + $0x20] sm:$0xff]   ;;  %v837_v22 = vld [vmem:[%s1124_s1 + $0x28] sm:$0xff]  }
   0x8   :  { %715 = vmatpush3.bf16.msra.mxu0 %v821_v6  ;;  %v830_v15 = vld [vmem:[%s1124_s1 + $0x98] sm:$0xff]   ;;  %v834_v19 = vld [vmem:[%s1124_s1 + $0xa0] sm:$0xff]   ;;  %v838_v23 = vld [vmem:[%s1124_s1 + $0xa8] sm:$0xff]  }
   0x9   :  { %743 = vmatpush3.bf16.msra.mxu1 %v822_v7  ;;  %716 = vmatprep.subr.bf16.mxu0 %v823_v8  ;;  %v839_v24 = vld [vmem:[%s1124_s1 + $0x70] sm:$0xff]   ;;  %v843_v28 = vld [vmem:[%s1124_s1 + $0x78] sm:$0xff]   ;;  %v850_v34 = vld [vmem:[%s1123_s0 + $0x8] ss:$24 sps:$4 sm:$0xff]  }
   0xa   :  { %744 = vmatprep.subr.bf16.mxu1 %v824_v9  ;;  %v840_v25 = vld [vmem:[%s1124_s1 + $0xf0] sm:$0xff]   ;;  %v844_v29 = vld [vmem:[%s1124_s1 + $0xf8] sm:$0xff]   ;;  %v852_v35 = vld [vmem:[%s1123_s0 + $0xc] ss:$24 sps:$4 sm:$0xff]  }
   0xb   :  { %v841_v26 = vld [vmem:[%s1124_s1 + $0x30] sm:$0xff]   ;;  %v845_v30 = vld [vmem:[%s1124_s1 + $0x38] sm:$0xff]   ;;  %v853_v36 = vld [vmem:[%s1124_s1 + $0x140] sm:$0xff]   ;;  %560 = vmatprep.mubr.bf16.mxu1 %v852_v35 }
   0xc   :  { %717 = vmatpush3.bf16.msra.mxu0 %v825_v10  ;;  %v842_v27 = vld [vmem:[%s1124_s1 + $0xb0] sm:$0xff]   ;;  %v846_v31 = vld [vmem:[%s1124_s1 + $0xb8] sm:$0xff]   ;;  %v854_v37 = vld [vmem:[%s1124_s1 + $0x100] sm:$0xff]  }
   0xd   :  { %745 = vmatpush3.bf16.msra.mxu1 %v826_v11  ;;  %718 = vmatprep.subr.bf16.mxu0 %v827_v12  ;;  %v847_v32 = vld [vmem:[%s1123_s0] ss:$24 sps:$4 sm:$0xff]   ;;  %v849_v33 = vld [vmem:[%s1123_s0 + $0x4] ss:$24 sps:$4 sm:$0xff]   ;;  %v855_v38 = vld [vmem:[%s1124_s1 + $0x148] sm:$0xff]  }
   0xe   :  { %746 = vmatprep.subr.bf16.mxu1 %v828_v13  ;;  %511 = vmatprep.mubr.bf16.mxu0 %v849_v33  ;;  %v856_v39 = vld [vmem:[%s1124_s1 + $0x108] sm:$0xff]   ;;  %v857_v40 = vld [vmem:[%s1124_s1 + $0x150] sm:$0xff]   ;;  %v859_v42 = vld [vmem:[%s1124_s1 + $0x158] sm:$0xff]  }
   0xf   :  { %v858_v41 = vld [vmem:[%s1124_s1 + $0x110] sm:$0xff]   ;;  %v860_v43 = vld [vmem:[%s1124_s1 + $0x118] sm:$0xff]   ;;  %v861_v47 = vld [vmem:[%s1124_s1 + $0x160] sm:$0xff]  }
  0x10   :  { %719 = vmatpush3.bf16.msra.mxu0 %v829_v14  ;;  %v863_v44 = vld [vmem:[%s1123_s0 + $0x34] ss:$24 sps:$4 sm:$0xff]   ;;  %v865_v45 = vld [vmem:[%s1123_s0 + $0x30] ss:$24 sps:$4 sm:$0xff]   ;;  %v862_v49 = vld [vmem:[%s1124_s1 + $0x120] sm:$0xff]  }
  0x11   :  { %747 = vmatpush3.bf16.msra.mxu1 %v830_v15  ;;  %720 = vmatprep.subr.bf16.mxu0 %v831_v16  ;;  %v866_v46 = vld [vmem:[%s1123_s0 + $0x3c] ss:$24 sps:$4 sm:$0xff]   ;;  %v869_v48 = vld [vmem:[%s1123_s0 + $0x38] ss:$24 sps:$4 sm:$0xff]   ;;  %v868_v50 = vld [vmem:[%s1124_s1 + $0x168] sm:$0xff]  }
  0x12   :  { %748 = vmatprep.subr.bf16.mxu1 %v832_v17  ;;  %v870_v51 = vld [vmem:[%s1124_s1 + $0x128] sm:$0xff]   ;;  %v871_v53 = vld [vmem:[%s1124_s1 + $0x170] sm:$0xff]   ;;  %v880_v54 = vld [vmem:[%s1123_s0 + $0x44] ss:$24 sps:$4 sm:$0xff]  }
  0x13   :  { %v877_v52 = vld [vmem:[%s1123_s0 + $0x14] ss:$24 sps:$4 sm:$0xff]  }
  0x14   :  { %721 = vmatpush3.bf16.msra.mxu0 %v833_v18 }
  0x15   :  { %749 = vmatpush3.bf16.msra.mxu1 %v834_v19  ;;  %722 = vmatprep.subr.bf16.mxu0 %v835_v20 }
  0x16   :  { %750 = vmatprep.subr.bf16.mxu1 %v836_v21 }
  0x18   :  { %723 = vmatpush3.bf16.msra.mxu0 %v837_v22 }
  0x19   :  { %751 = vmatpush3.bf16.msra.mxu1 %v838_v23  ;;  %724 = vmatprep.subr.bf16.mxu0 %v839_v24 }
  0x1a   :  { %752 = vmatprep.subr.bf16.mxu1 %v840_v25 }
  0x1c   :  { %725 = vmatpush3.bf16.msra.mxu0 %v841_v26 }
  0x1d   :  { %753 = vmatpush3.bf16.msra.mxu1 %v842_v27  ;;  %726 = vmatprep.subr.bf16.mxu0 %v843_v28 }
  0x1e   :  { %754 = vmatprep.subr.bf16.mxu1 %v844_v29 }
  0x20   :  { %727 = vmatpush3.bf16.msra.mxu0 %v845_v30 }
  0x21   :  { %755 = vmatpush3.bf16.msra.mxu1 %v846_v31  ;;  %768 = vmatprep.subr.bf16.mxu0 %v853_v36 }
  0x22   :  { %796 = vmatprep.subr.bf16.mxu1 %v853_v36 }
  0x23   :  { %512 = vmatmul.mubr.bf16.vlgmr.msra.gmra.mrb[0].mxu0 %v847_v32 }
  0x24   :  { %561 = vmatmul.mubr.bf16.vlgmr.msra.gmra.mrb[0].mxu1 %v850_v34  ;;  %769 = vmatpush3.bf16.msra.mxu0 %v854_v37 }
  0x25   :  { %804 = vmatpush3.bf16.msra.mxu1 %v854_v37  ;;  %770 = vmatprep.subr.bf16.mxu0 %v855_v38 }
  0x26   :  { %797 = vmatprep.subr.bf16.mxu1 %v855_v38  ;;  %519 = vmatprep.mubr.bf16.mxu0 %v863_v44 }
  0x27   :  { %568 = vmatprep.mubr.bf16.mxu1 %v866_v46 }
  0x28   :  { %771 = vmatpush3.bf16.msra.mxu0 %v856_v39 }
  0x29   :  { %805 = vmatpush3.bf16.msra.mxu1 %v856_v39  ;;  %772 = vmatprep.subr.bf16.mxu0 %v857_v40 }
  0x2a   :  { %798 = vmatprep.subr.bf16.mxu1 %v857_v40 }
  0x2b   :  { %520 = vmatmul.mubr.bf16.gmra.mrb[4].mxu0 %v865_v45 }
  0x2c   :  { %773 = vmatpush3.bf16.msra.mxu0 %v858_v41  ;;  %569 = vmatmul.mubr.bf16.gmra.mrb[4].mxu1 %v869_v48 }
  0x2d   :  { %806 = vmatpush3.bf16.msra.mxu1 %v858_v41  ;;  %774 = vmatprep.subr.bf16.mxu0 %v859_v42 }
  0x2e   :  { %799 = vmatprep.subr.bf16.mxu1 %v859_v42  ;;  %609 = vmatprep.mubr.bf16.mxu0 %v877_v52 }
  0x30   :  { %775 = vmatpush3.bf16.msra.mxu0 %v860_v43 }
  0x31   :  { %807 = vmatpush3.bf16.msra.mxu1 %v860_v43  ;;  %776 = vmatprep.subr.bf16.mxu0 %v861_v47 }
  0x32   :  { %800 = vmatprep.subr.bf16.mxu1 %v861_v47 }
  0x34   :  { %777 = vmatpush3.bf16.msra.mxu0 %v862_v49 }
  0x35   :  { %808 = vmatpush3.bf16.msra.mxu1 %v862_v49  ;;  %778 = vmatprep.subr.bf16.mxu0 %v868_v50 }
  0x36   :  { %801 = vmatprep.subr.bf16.mxu1 %v868_v50 }
  0x37   :  { %8 = vsyncpa [#allocation3], 0  ;;  %617 = vmatprep.mubr.bf16.mxu1 %v880_v54  ;;  %v872_v55 = vld [vmem:[%s1124_s1 + $0x130] sm:$0xff]   ;;  %v873_v56 = vld [vmem:[%s1124_s1 + $0x178] sm:$0xff]   ;;  %vm630_vm0 = vcmask 523264  }
  0x38   :  { %779 = vmatpush3.bf16.msra.mxu0 %v870_v51  ;;  %v874_v57 = vld [vmem:[%s1124_s1 + $0x138] sm:$0xff]   ;;  %v875_v58 = vld [vmem:[%s1123_s0 + $0x10] ss:$24 sps:$4 sm:$0xff]   ;;  %v651_v62 = vld [vmem:[%s1125_s2] ss:$0 sm:$0xff] }
  0x39   :  { %809 = vmatpush3.bf16.msra.mxu1 %v870_v51  ;;  %780 = vmatprep.subr.bf16.mxu0 %v871_v53  ;;  %v878_v59 = vld [vmem:[%s1123_s0 + $0x40] ss:$24 sps:$4 sm:$0xff]   ;;  %s905_s0 = smov [#allocation2]  }
  0x3a   :  { %802 = vmatprep.subr.bf16.mxu1 %v871_v53  ;;  %s640_s1 = sshll.u32 %s905_s0, 4  ;;  %s641_s1 = int_to_ptr.vmem [resolvable:$true] %s640_s1 }
  0x3b   :  { %s881_s2 = scalar_lea.vmem %s641_s1, 512  ;;  %p886_p1 = scmp.lt.s32.totalorder %s641_s1, %s641_s1 }
  0x3c   :  { %781 = vmatpush3.bf16.msra.mxu0 %v872_v55  ;;  %p882_p0 = scmp.ne.s32.totalorder %s641_s1, %s881_s2  ;;  %p887_p2 = scmp.lt.s32.totalorder %s881_s2, %s881_s2 }
  0x3d   :  { %810 = vmatpush3.bf16.msra.mxu1 %v872_v55  ;;  %782 = vmatprep.subr.bf16.mxu0 %v873_v56 }
  0x3e   :  { %803 = vmatprep.subr.bf16.mxu1 %v873_v56  ;;  %p888_p3 = por %p887_p2, %p886_p1 }
  0x40   :  { %783 = vmatpush3.bf16.msra.mxu0 %v874_v57  ;;  %p889_p4 = pnand %p888_p3, %p882_p0 }
  0x41   :  { %811 = vmatpush3.bf16.msra.mxu1 %v874_v57 }
  0x43   :  { %610 = vmatmul.mubr.bf16.vlgmr.msra.gmra.mrb[8].mxu0 %v875_v58 }
  0x44   :  { %618 = vmatmul.mubr.bf16.vlgmr.msra.gmra.mrb[8].mxu1 %v878_v59 }
  0xf6   :  { %v728_v60 = vpop.f32.mrb[0].mxu0 }
  0xf7   :  { %v756_v61 = vpop.f32.mrb[0].mxu1  ;;  %v729_v63 = vpop.f32.mrb[1].mxu0 }
  0xf8   :  { %v730_v0 = vadd.f32 %v729_v63, %v728_v60  ;;  %v757_v1 = vpop.f32.mrb[1].mxu1  ;;  %v731_v2 = vpop.f32.mrb[2].mxu0 }
  0xf9   :  { %v758_v3 = vadd.f32 %v757_v1, %v756_v61  ;;  %v759_v4 = vpop.f32.mrb[2].mxu1  ;;  %v732_v5 = vpop.f32.mrb[3].mxu0 }
  0xfa   :  { %v514_v6 = vadd.f32 %v730_v0, %v651_v62  ;;  %v733_v7 = vadd.f32 %v732_v5, %v731_v2  ;;  %v760_v8 = vpop.f32.mrb[3].mxu1 }
  0xfb   :  { %v761_v9 = vadd.f32 %v760_v8, %v759_v4 }
  0xfc   :  { %v563_v10 = vadd.f32 %v758_v3, %v514_v6  ;;  %v517_v11 = vadd.f32 %v733_v7, %v651_v62 }
  0xfe   :  { %v566_v12 = vadd.f32 %v761_v9, %v517_v11  ;;  %v734_v13 = vpop.f32.mrb[4].mxu0 }
  0xff   :  { %v735_v14 = vpop.f32.mrb[5].mxu0  ;;  %v762_v15 = vpop.f32.mrb[4].mxu1 }
 0x100   :  { %v736_v16 = vadd.f32 %v735_v14, %v734_v13  ;;  %v737_v17 = vpop.f32.mrb[6].mxu0  ;;  %v763_v18 = vpop.f32.mrb[5].mxu1 }
 0x101   :  { %v738_v19 = vpop.f32.mrb[7].mxu0  ;;  %v764_v20 = vadd.f32 %v763_v18, %v762_v15  ;;  %v765_v21 = vpop.f32.mrb[6].mxu1 }
 0x102   :  { %v522_v22 = vadd.f32 %v736_v16, %v651_v62  ;;  %v739_v23 = vadd.f32 %v738_v19, %v737_v17  ;;  %v766_v24 = vpop.f32.mrb[7].mxu1 }
 0x103   :  { %v767_v25 = vadd.f32 %v766_v24, %v765_v21 }
 0x104   :  { %v525_v26 = vadd.f32 %v739_v23, %v651_v62  ;;  %v571_v27 = vadd.f32 %v764_v20, %v522_v22 }
 0x106   :  { %v574_v28 = vadd.f32 %v767_v25, %v525_v26 }
 0x116   :  { %v784_v29 = vpop.f32.mrb[8].mxu0 }
 0x117   :  { %v790_v30 = vpop.f32.mrb[8].mxu1  ;;  %v785_v31 = vpop.f32.mrb[9].mxu0 }
 0x118   :  { %v786_v32 = vadd.f32 %v785_v31, %v784_v29  ;;  %v791_v33 = vpop.f32.mrb[9].mxu1  ;;  %v787_v34 = vpop.f32.mrb[10].mxu0 }
 0x119   :  { %v792_v35 = vadd.f32 %v791_v33, %v790_v30  ;;  %v793_v36 = vpop.f32.mrb[10].mxu1  ;;  %v788_v37 = vpop.f32.mrb[11].mxu0 }
 0x11a   :  { %v612_v38 = vadd.f32 %v786_v32, %v563_v10  ;;  %v789_v39 = vadd.f32 %v788_v37, %v787_v34  ;;  %v794_v40 = vpop.f32.mrb[11].mxu1 }
 0x11b   :  { %v620_v41 = vadd.f32 %v792_v35, %v571_v27  ;;  %v795_v42 = vadd.f32 %v794_v40, %v793_v36 }
 0x11c   :  { %v626_v43 = vmax.f32 %v612_v38, 0.0  ;;  %v615_v44 = vadd.f32 %v789_v39, %v566_v12 }
 0x11d   :  { %v628_v45 = vmax.f32 %v620_v41, 0.0  ;;  %v623_v46 = vadd.f32 %v795_v42, %v574_v28 }
 0x11e   :  { %631 = vst.msk [vmem:[#allocation2] sm:$0xff] %vm630_vm0, %v626_v43  ;;  %v627_v47 = vmax.f32 %v615_v44, 0.0 }
 0x11f   :  { %633 = vst.msk [vmem:[#allocation2 + $0x10] sm:$0xff] %vm630_vm0, %v628_v45  ;;  %v629_v48 = vmax.f32 %v623_v46, 0.0 }
 0x120   :  { %632 = vst.msk [vmem:[#allocation2 + $0x8] sm:$0xff] %vm630_vm0, %v627_v47 }
 0x121   :  { %634 = vst.msk [vmem:[#allocation2 + $0x18] sm:$0xff] %vm630_vm0, %v629_v48 }
 0x122   :  { %892 = shalt.err (!%p889_p4)
}
 0x123   :  { %s893_s28 = scalar_lea.hbm %s1126_s3, 512 }
 0x124   :  { %p894_p5 = scmp.ne.s32.totalorder %s1126_s3, %s893_s28  ;;  %p897_p6 = scmp.lt.u32.totalorder %s893_s28, %s1126_s3 }
 0x126   :  { %p899_p7 = pnand %p897_p6, %p894_p5 }
 0x128   :  { %902 = shalt.err (!%p899_p7)
}
 0x129   :  { %s906_s6 = smov 128   ;;  %s907_s7 = smov 8  }
 0x12a   :  { %646 = dma.vmem_to_hbm [thread:$0]  %s641_s1, 512, %s1126_s3, [#allocation3], %s906_s6, %s906_s6, %s907_s7  }
 0x12b   :  { %903 = dma.done.wait [#allocation3], 512  }
 0x12c   :  { %904 = vsyncadd [#allocation3], 4294966784 }
 0x12d   :  { %650 = vsyncpa [#allocation3], 1 }

</bundles_post_ra>
